<compile_context>
chip_gen: v7x
topology: tpu7x:2x2x1
jax: 0.10.0
libtpu: 0.0.40
codegen_flags: <defaults>
</compile_context>

<pallas_src>
import functools

import jax
import jax.numpy as jnp
from jax.experimental import pallas as pl
from jax.experimental.pallas import tpu as pltpu

LANE = 128     # vreg lane width
SUBLANE = 8    # f32 sublane count


def _round_up(x, m):
    return (x + m - 1) // m * m


def policy_mlp_kernel(x_ref, w1_ref, b1_ref, w2_ref, b2_ref, w3_ref, b3_ref, o_ref):
    """One batch tile of Linear->ReLU->Linear->Hardswish->Linear (fused)."""
    cdt = w1_ref.dtype  # dot-operand dtype (bf16 fast path or f32 exact path)

    x = x_ref[...].astype(cdt)

    # Linear 1 + ReLU (f32 accumulation on MXU, activation in f32 on VPU)
    h1 = jnp.dot(x, w1_ref[...], preferred_element_type=jnp.float32) + b1_ref[...]
    h1 = jnp.maximum(h1, 0.0)

    # Linear 2 + Hardswish: z * relu6(z + 3) / 6
    z = jnp.dot(h1.astype(cdt), w2_ref[...], preferred_element_type=jnp.float32) + b2_ref[...]
    h2 = z * jnp.clip(z + 3.0, 0.0, 6.0) * (1.0 / 6.0)

    # Linear 3 (logits, no activation)
    out = jnp.dot(h2.astype(cdt), w3_ref[...], preferred_element_type=jnp.float32) + b3_ref[...]
    o_ref[...] = out.astype(o_ref.dtype)


def policy_forward(state, params, *, use_bf16=True, tile_b=None):
    """state: [B, state_dim] float32. params: dict of (w1,b1,w2,b2,w3,b3)."""
    w1, b1, w2, b2, w3, b3 = (
        params["w1"], params["b1"], params["w2"],
        params["b2"], params["w3"], params["b3"],
    )
    B, S = state.shape
    H = w1.shape[1]
    A = w3.shape[1]

    # Lane-dense padding of every feature dim.
    Sp, Hp, Ap = (_round_up(d, LANE) for d in (S, H, A))

    # Batch tile: large tiles amortize per-grid-step overhead; tiny demo batches
    # get a single sublane-aligned tile.
    if tile_b is None:
        tile_b = min(512, _round_up(B, SUBLANE))
    Bp = _round_up(B, tile_b)

    op_dtype = jnp.bfloat16 if use_bf16 else jnp.float32

    def pad_x(x):
        return jnp.zeros((Bp, Sp), jnp.float32).at[:B, :S].set(x.astype(jnp.float32))

    def pad_w(w, r, c):
        return jnp.zeros((r, c), op_dtype).at[:w.shape[0], :w.shape[1]].set(w.astype(op_dtype))

    def pad_b(b, c):
        return jnp.zeros((1, c), jnp.float32).at[:, :b.shape[1]].set(b.astype(jnp.float32))

    xp = pad_x(state)
    w1p, w2p, w3p = pad_w(w1, Sp, Hp), pad_w(w2, Hp, Hp), pad_w(w3, Hp, Ap)
    b1p, b2p, b3p = pad_b(b1, Hp), pad_b(b2, Hp), pad_b(b3, Ap)

    grid = (Bp // tile_b,)

    # Weights/biases: constant index_map -> resident in VMEM across the grid.
    resident = lambda shape: pl.BlockSpec(shape, lambda i: (0, 0))

    flops = 2 * Bp * (Sp * Hp + Hp * Hp + Hp * Ap)
    bytes_accessed = (
        xp.size * xp.dtype.itemsize
        + sum(a.size * a.dtype.itemsize for a in (w1p, b1p, w2p, b2p, w3p, b3p))
        + Bp * Ap * 4
    )

    out_padded = pl.pallas_call(
        policy_mlp_kernel,
        out_shape=jax.ShapeDtypeStruct((Bp, Ap), jnp.float32),
        grid=grid,
        in_specs=[
            pl.BlockSpec((tile_b, Sp), lambda i: (i, 0)),   # state tile streams
            resident((Sp, Hp)), resident((1, Hp)),          # layer 1
            resident((Hp, Hp)), resident((1, Hp)),          # layer 2
            resident((Hp, Ap)), resident((1, Ap)),          # layer 3
        ],
        out_specs=pl.BlockSpec((tile_b, Ap), lambda i: (i, 0)),
        compiler_params=pltpu.CompilerParams(
            dimension_semantics=("parallel",),              # megacore over batch
        ),
        cost_estimate=pl.CostEstimate(
            flops=flops, transcendentals=0, bytes_accessed=bytes_accessed),
    )(xp, w1p, b1p, w2p, b2p, w3p, b3p)

    return out_padded[:B, :A]


policy_forward_jit = jax.jit(policy_forward, static_argnames=("use_bf16", "tile_b"))


def init_params(key, state_dim, hidden_dim, action_dim):
    """Deterministic init mimicking PyTorch nn.Linear default U[-1/sqrt(fan_in), 1/sqrt(fan_in)]."""
    ks = jax.random.split(key, 6)

    def linear(kw, kb, fan_in, fan_out):
        bound = 1.0 / jnp.sqrt(jnp.float32(fan_in))
        w = jax.random.uniform(kw, (fan_in, fan_out), jnp.float32, -bound, bound)
        b = jax.random.uniform(kb, (1, fan_out), jnp.float32, -bound, bound)
        return w, b

    w1, b1 = linear(ks[0], ks[1], state_dim, hidden_dim)
    w2, b2 = linear(ks[2], ks[3], hidden_dim, hidden_dim)
    w3, b3 = linear(ks[4], ks[5], hidden_dim, action_dim)
    return {"w1": w1, "b1": b1, "w2": w2, "b2": b2, "w3": w3, "b3": b3}


def _reference(state, p):
    h1 = jnp.maximum(state @ p["w1"] + p["b1"], 0.0)
    z = h1 @ p["w2"] + p["b2"]
    h2 = z * jnp.clip(z + 3.0, 0.0, 6.0) / 6.0
    return h2 @ p["w3"] + p["b3"]


def _reference_bf16(state, p):
    bf = jnp.bfloat16

    def lin(x, w, b):
        return jnp.dot(x.astype(bf), w.astype(bf), preferred_element_type=jnp.float32) + b

    h1 = jnp.maximum(lin(state, p["w1"], p["b1"]), 0.0)
    z = lin(h1, p["w2"], p["b2"])
    h2 = z * jnp.clip(z + 3.0, 0.0, 6.0) / 6.0
    return lin(h2, p["w3"], p["b3"])


if __name__ == "__main__":
    # Small shapes consistent with the module (args.state_dim / hidden_dim / action_dim)
    B, state_dim, hidden_dim, action_dim = 8, 8, 32, 4

    key = jax.random.PRNGKey(0)
    k_state, k_params, k_big = jax.random.split(key, 3)
    state = jax.random.normal(k_state, (B, state_dim), jnp.float32)
    params = init_params(k_params, state_dim, hidden_dim, action_dim)

    # 1) exact-semantics path (f32 dot operands) at the module's shapes
    out_f32 = jax.block_until_ready(policy_forward_jit(state, params, use_bf16=False))
    ref = _reference(state, params)
    assert out_f32.shape == (B, action_dim)
    assert jnp.allclose(out_f32, ref, atol=1e-4, rtol=1e-4), "f32 kernel mismatch vs reference"

    # 2) bf16-operand / f32-accumulate fast path (v6e/v7x MXU-native)
    out_bf16 = jax.block_until_ready(policy_forward_jit(state, params, use_bf16=True))
    assert out_bf16.shape == (B, action_dim)
    assert jnp.allclose(out_bf16, _reference_bf16(state, params), atol=1e-2, rtol=1e-2), \
        "bf16 kernel mismatch vs bf16 reference"

    # 3) batched call exercising the 1-D grid over B (multiple tiles, 'parallel' axis)
    big_B = 1024
    big_state = jax.random.normal(k_big, (big_B, state_dim), jnp.float32)
    out_big = jax.block_until_ready(
        policy_forward_jit(big_state, params, use_bf16=False, tile_b=256))
    assert out_big.shape == (big_B, action_dim)
    assert jnp.allclose(out_big, _reference(big_state, params), atol=1e-4, rtol=1e-4), \
        "tiled kernel mismatch vs reference"

    print("KERNEL_OK")
</pallas_src>

<mosaic_0001>
module attributes {stable_mosaic.version = 11 : i64} {
  func.func @policy_mlp_kernel(%arg0: i32, %arg1: memref<8x128xf32, #tpu.memory_space<vmem>>, %arg2: memref<128x128xf32, #tpu.memory_space<vmem>>, %arg3: memref<1x128xf32, #tpu.memory_space<vmem>>, %arg4: memref<128x128xf32, #tpu.memory_space<vmem>>, %arg5: memref<1x128xf32, #tpu.memory_space<vmem>>, %arg6: memref<128x128xf32, #tpu.memory_space<vmem>>, %arg7: memref<1x128xf32, #tpu.memory_space<vmem>>, %arg8: memref<8x128xf32, #tpu.memory_space<vmem>>) attributes {dimension_semantics = [#tpu.dimension_semantics<parallel>], iteration_bounds = array<i64: 1>, scalar_prefetch = 0 : i64, scratch_operands = 0 : i64, tpu.core_type = #tpu.core_type<tc>, window_params = [{transform_indices = @transform_0, window_bounds = array<i64: 8, 128>}, {pipeline_mode = #tpu.pipeline_mode<synchronous>, transform_indices = @transform_1, window_bounds = array<i64: 128, 128>}, {pipeline_mode = #tpu.pipeline_mode<synchronous>, transform_indices = @transform_2, window_bounds = array<i64: 1, 128>}, {pipeline_mode = #tpu.pipeline_mode<synchronous>, transform_indices = @transform_3, window_bounds = array<i64: 128, 128>}, {pipeline_mode = #tpu.pipeline_mode<synchronous>, transform_indices = @transform_4, window_bounds = array<i64: 1, 128>}, {pipeline_mode = #tpu.pipeline_mode<synchronous>, transform_indices = @transform_5, window_bounds = array<i64: 128, 128>}, {pipeline_mode = #tpu.pipeline_mode<synchronous>, transform_indices = @transform_6, window_bounds = array<i64: 1, 128>}, {transform_indices = @transform_7, window_bounds = array<i64: 8, 128>}]} {
    %c0 = arith.constant 0 : index
    %c0_0 = arith.constant 0 : index
    %0 = vector.load %arg1[%c0, %c0_0] : memref<8x128xf32, #tpu.memory_space<vmem>>, vector<8x128xf32>
    %c0_1 = arith.constant 0 : index
    %c0_2 = arith.constant 0 : index
    %1 = vector.load %arg2[%c0_1, %c0_2] : memref<128x128xf32, #tpu.memory_space<vmem>>, vector<128x128xf32>
    %cst = arith.constant dense<0.000000e+00> : vector<8x128xf32>
    %2 = tpu.matmul %0, %1, %cst {dimension_numbers = #tpu.dot_dimension_numbers<[1], [0], [0], [1], [0, 0, 1, 1], [], []>} : vector<8x128xf32>, vector<128x128xf32>, vector<8x128xf32> -> vector<8x128xf32>
    %c0_3 = arith.constant 0 : index
    %c0_4 = arith.constant 0 : index
    %3 = vector.load %arg3[%c0_3, %c0_4] : memref<1x128xf32, #tpu.memory_space<vmem>>, vector<1x128xf32>
    %4 = vector.broadcast %3 : vector<1x128xf32> to vector<8x128xf32>
    %5 = arith.addf %2, %4 : vector<8x128xf32>
    %cst_5 = arith.constant 0.000000e+00 : f32
    %6 = vector.broadcast %cst_5 : f32 to vector<8x128xf32>
    %7 = arith.maximumf %5, %6 : vector<8x128xf32>
    %c0_6 = arith.constant 0 : index
    %c0_7 = arith.constant 0 : index
    %8 = vector.load %arg4[%c0_6, %c0_7] : memref<128x128xf32, #tpu.memory_space<vmem>>, vector<128x128xf32>
    %cst_8 = arith.constant dense<0.000000e+00> : vector<8x128xf32>
    %9 = tpu.matmul %7, %8, %cst_8 {dimension_numbers = #tpu.dot_dimension_numbers<[1], [0], [0], [1], [0, 0, 1, 1], [], []>} : vector<8x128xf32>, vector<128x128xf32>, vector<8x128xf32> -> vector<8x128xf32>
    %c0_9 = arith.constant 0 : index
    %c0_10 = arith.constant 0 : index
    %10 = vector.load %arg5[%c0_9, %c0_10] : memref<1x128xf32, #tpu.memory_space<vmem>>, vector<1x128xf32>
    %11 = vector.broadcast %10 : vector<1x128xf32> to vector<8x128xf32>
    %12 = arith.addf %9, %11 : vector<8x128xf32>
    %cst_11 = arith.constant 3.000000e+00 : f32
    %13 = vector.broadcast %cst_11 : f32 to vector<8x128xf32>
    %14 = arith.addf %12, %13 : vector<8x128xf32>
    %cst_12 = arith.constant 0.000000e+00 : f32
    %cst_13 = arith.constant 6.000000e+00 : f32
    %15 = vector.broadcast %cst_12 : f32 to vector<8x128xf32>
    %16 = arith.maximumf %15, %14 : vector<8x128xf32>
    %17 = vector.broadcast %cst_13 : f32 to vector<8x128xf32>
    %18 = arith.minimumf %17, %16 : vector<8x128xf32>
    %19 = arith.mulf %12, %18 : vector<8x128xf32>
    %cst_14 = arith.constant 0.166666672 : f32
    %20 = vector.broadcast %cst_14 : f32 to vector<8x128xf32>
    %21 = arith.mulf %19, %20 : vector<8x128xf32>
    %c0_15 = arith.constant 0 : index
    %c0_16 = arith.constant 0 : index
    %22 = vector.load %arg6[%c0_15, %c0_16] : memref<128x128xf32, #tpu.memory_space<vmem>>, vector<128x128xf32>
    %cst_17 = arith.constant dense<0.000000e+00> : vector<8x128xf32>
    %23 = tpu.matmul %21, %22, %cst_17 {dimension_numbers = #tpu.dot_dimension_numbers<[1], [0], [0], [1], [0, 0, 1, 1], [], []>} : vector<8x128xf32>, vector<128x128xf32>, vector<8x128xf32> -> vector<8x128xf32>
    %c0_18 = arith.constant 0 : index
    %c0_19 = arith.constant 0 : index
    %24 = vector.load %arg7[%c0_18, %c0_19] : memref<1x128xf32, #tpu.memory_space<vmem>>, vector<1x128xf32>
    %25 = vector.broadcast %24 : vector<1x128xf32> to vector<8x128xf32>
    %26 = arith.addf %23, %25 : vector<8x128xf32>
    %c0_20 = arith.constant 0 : index
    %c0_21 = arith.constant 0 : index
    %27 = vector.load %arg8[%c0_20, %c0_21] : memref<8x128xf32, #tpu.memory_space<vmem>>, vector<8x128xf32>
    tpu.vector_store %arg8[%c0_20, %c0_21], %26 {strides = array<i32>} : memref<8x128xf32, #tpu.memory_space<vmem>>, vector<8x128xf32>,
    return
  }
  func.func @transform_0(%arg0: i32) -> (i32, i32) {
    %c0_i32 = arith.constant 0 : i32
    %c0_i32_0 = arith.constant 0 : i32
    return %arg0, %c0_i32 : i32, i32
  }
  func.func @transform_1(%arg0: i32) -> (i32, i32) {
    %c0_i32 = arith.constant 0 : i32
    %c0_i32_0 = arith.constant 0 : i32
    %c0_i32_1 = arith.constant 0 : i32
    return %c0_i32, %c0_i32_0 : i32, i32
  }
  func.func @transform_2(%arg0: i32) -> (i32, i32) {
    %c0_i32 = arith.constant 0 : i32
    %c0_i32_0 = arith.constant 0 : i32
    %c0_i32_1 = arith.constant 0 : i32
    return %c0_i32, %c0_i32_0 : i32, i32
  }
  func.func @transform_3(%arg0: i32) -> (i32, i32) {
    %c0_i32 = arith.constant 0 : i32
    %c0_i32_0 = arith.constant 0 : i32
    %c0_i32_1 = arith.constant 0 : i32
    return %c0_i32, %c0_i32_0 : i32, i32
  }
  func.func @transform_4(%arg0: i32) -> (i32, i32) {
    %c0_i32 = arith.constant 0 : i32
    %c0_i32_0 = arith.constant 0 : i32
    %c0_i32_1 = arith.constant 0 : i32
    return %c0_i32, %c0_i32_0 : i32, i32
  }
  func.func @transform_5(%arg0: i32) -> (i32, i32) {
    %c0_i32 = arith.constant 0 : i32
    %c0_i32_0 = arith.constant 0 : i32
    %c0_i32_1 = arith.constant 0 : i32
    return %c0_i32, %c0_i32_0 : i32, i32
  }
  func.func @transform_6(%arg0: i32) -> (i32, i32) {
    %c0_i32 = arith.constant 0 : i32
    %c0_i32_0 = arith.constant 0 : i32
    %c0_i32_1 = arith.constant 0 : i32
    return %c0_i32, %c0_i32_0 : i32, i32
  }
  func.func @transform_7(%arg0: i32) -> (i32, i32) {
    %c0_i32 = arith.constant 0 : i32
    %c0_i32_0 = arith.constant 0 : i32
    return %arg0, %c0_i32 : i32, i32
  }
}

</mosaic_0001>

<bundles_post_ra>
// kernel: policy_forward.1
= control target key start
LH: loop header
LB: loop body
LE: loop exit
PB: predicated region body
PF: predicated region fallthrough
CT: control target
= control target key end

     0   :  { %v551_v0 = vmov 0.0|0.0   ;;  %vm552_vm0 = vmmov 0   ;;  %v553_v4 = vmov 0.0   ;;  %s783_s1 = inlined_call_operand.vmem [shape: f32[128,128], index: 1, kind: input, shape index: {}]   ;;  %s784_s3 = inlined_call_operand.vmem [shape: f32[128,128], index: 3, kind: input, shape index: {}]   ;;  %s785_s0 = inlined_call_operand.vmem [shape: f32[8,128], index: 0, kind: input, shape index: {}]   ;;  %s786_s5 = inlined_call_operand.vmem [shape: f32[128,128], index: 5, kind: input, shape index: {}]   ;;  %s787_s2 = inlined_call_operand.vmem [shape: f32[1,128], index: 2, kind: input, shape index: {}]   ;;  %s788_s4 = inlined_call_operand.vmem [shape: f32[1,128], index: 4, kind: input, shape index: {}]   ;;  %s789_s6 = inlined_call_operand.vmem [shape: f32[1,128], index: 6, kind: input, shape index: {}]   ;;  %s790_s7 = inlined_call_operand.vmem [shape: f32[8,128], index: 7, kind: output, shape index: {}]  }
   0x1   :  { %476 = vmatprep.subr.bf16.mxu0 %v551_v0  ;;  %v27_v1 = vld [vmem:[%s783_s1] sm:$0xff]  ;;  %v28_v2 = vld [vmem:[%s783_s1 + $0x8] sm:$0xff]  ;;  %v29_v3 = vld [vmem:[%s783_s1 + $0x10] sm:$0xff]  ;;  %403 = vmatprep.mubr.msk.f32.mxu0 %vm552_vm0, %v553_v4 }
   0x2   :  { %v477_v5 = vpack.c.bf16 %v28_v2, %v27_v1  ;;  %v30_v6 = vld [vmem:[%s783_s1 + $0x18] sm:$0xff]  ;;  %500 = vmatprep.subr.bf16.mxu1 %v551_v0  ;;  %438 = vmatprep.mubr.msk.f32.mxu1 %vm552_vm0, %v553_v4  ;;  %v31_v8 = vld [vmem:[%s783_s1 + $0x20] sm:$0xff]  ;;  %v32_v9 = vld [vmem:[%s783_s1 + $0x28] sm:$0xff] }
   0x3   :  { %v480_v7 = vpack.c.bf16 %v30_v6, %v29_v3  ;;  %v121_v10 = vld [vmem:[%s784_s3] sm:$0xff]  ;;  %v122_v11 = vld [vmem:[%s784_s3 + $0x8] sm:$0xff]  ;;  %v123_v12 = vld [vmem:[%s784_s3 + $0x10] sm:$0xff]  ;;  %v483_v14 = vpack.c.bf16 %v32_v9, %v31_v8 }
   0x4   :  { %478 = vmatpush3.bf16.msra.mxu0 %v477_v5  ;;  %v124_v13 = vld [vmem:[%s784_s3 + $0x18] sm:$0xff]  ;;  %v501_v15 = vpack.c.bf16 %v122_v11, %v121_v10  ;;  %v33_v16 = vld [vmem:[%s783_s1 + $0x30] sm:$0xff]  ;;  %v125_v19 = vld [vmem:[%s784_s3 + $0x20] sm:$0xff] }
   0x5   :  { %479 = vmatprep.subr.bf16.mxu0 %v551_v0  ;;  %v34_v17 = vld [vmem:[%s783_s1 + $0x38] sm:$0xff]  ;;  %v504_v18 = vpack.c.bf16 %v124_v13, %v123_v12  ;;  %v126_v20 = vld [vmem:[%s784_s3 + $0x28] sm:$0xff]  ;;  %v35_v22 = vld [vmem:[%s783_s1 + $0x40] sm:$0xff] }
   0x6   :  { %502 = vmatpush3.bf16.msra.mxu1 %v501_v15  ;;  %v486_v21 = vpack.c.bf16 %v34_v17, %v33_v16  ;;  %v36_v23 = vld [vmem:[%s783_s1 + $0x48] sm:$0xff]  ;;  %v507_v24 = vpack.c.bf16 %v126_v20, %v125_v19  ;;  %v127_v25 = vld [vmem:[%s784_s3 + $0x30] sm:$0xff]  ;;  %v128_v26 = vld [vmem:[%s784_s3 + $0x38] sm:$0xff] }
   0x7   :  { %503 = vmatprep.subr.bf16.mxu1 %v551_v0  ;;  %v489_v27 = vpack.c.bf16 %v36_v23, %v35_v22  ;;  %v37_v28 = vld [vmem:[%s783_s1 + $0x50] sm:$0xff]  ;;  %v38_v29 = vld [vmem:[%s783_s1 + $0x58] sm:$0xff]  ;;  %v510_v30 = vpack.c.bf16 %v128_v26, %v127_v25  ;;  %v129_v31 = vld [vmem:[%s784_s3 + $0x40] sm:$0xff] }
   0x8   :  { %481 = vmatpush3.bf16.msra.mxu0 %v480_v7  ;;  %v130_v32 = vld [vmem:[%s784_s3 + $0x48] sm:$0xff]  ;;  %v492_v33 = vpack.c.bf16 %v38_v29, %v37_v28  ;;  %v39_v34 = vld [vmem:[%s783_s1 + $0x60] sm:$0xff]  ;;  %v131_v37 = vld [vmem:[%s784_s3 + $0x50] sm:$0xff] }
   0x9   :  { %482 = vmatprep.subr.bf16.mxu0 %v551_v0  ;;  %v40_v35 = vld [vmem:[%s783_s1 + $0x68] sm:$0xff]  ;;  %v513_v36 = vpack.c.bf16 %v130_v32, %v129_v31  ;;  %v132_v38 = vld [vmem:[%s784_s3 + $0x58] sm:$0xff]  ;;  %v41_v40 = vld [vmem:[%s783_s1 + $0x70] sm:$0xff] }
   0xa   :  { %505 = vmatpush3.bf16.msra.mxu1 %v504_v18  ;;  %v495_v39 = vpack.c.bf16 %v40_v35, %v39_v34  ;;  %v42_v41 = vld [vmem:[%s783_s1 + $0x78] sm:$0xff]  ;;  %v516_v42 = vpack.c.bf16 %v132_v38, %v131_v37  ;;  %v133_v43 = vld [vmem:[%s784_s3 + $0x60] sm:$0xff]  ;;  %v134_v44 = vld [vmem:[%s784_s3 + $0x68] sm:$0xff] }
   0xb   :  { %506 = vmatprep.subr.bf16.mxu1 %v551_v0  ;;  %v498_v45 = vpack.c.bf16 %v42_v41, %v41_v40  ;;  %v519_v46 = vpack.c.bf16 %v134_v44, %v133_v43  ;;  %v26_v47 = vld [vmem:[%s785_s0] sm:$0xff]  ;;  %v135_v48 = vld [vmem:[%s784_s3 + $0x70] sm:$0xff]  ;;  %v136_v49 = vld [vmem:[%s784_s3 + $0x78] sm:$0xff] }
   0xc   :  { %484 = vmatpush3.bf16.msra.mxu0 %v483_v14  ;;  %v522_v50 = vpack.c.bf16 %v136_v49, %v135_v48  ;;  %v219_v51 = vld [vmem:[%s786_s5] sm:$0xff]  ;;  %v220_v52 = vld [vmem:[%s786_s5 + $0x8] sm:$0xff]  ;;  %v221_v53 = vld [vmem:[%s786_s5 + $0x10] sm:$0xff] }
   0xd   :  { %485 = vmatprep.subr.bf16.mxu0 %v551_v0  ;;  %v525_v54 = vpack.c.bf16 %v220_v52, %v219_v51  ;;  %v222_v55 = vld [vmem:[%s786_s5 + $0x18] sm:$0xff]  ;;  %v223_v57 = vld [vmem:[%s786_s5 + $0x20] sm:$0xff]  ;;  %v224_v58 = vld [vmem:[%s786_s5 + $0x28] sm:$0xff] }
   0xe   :  { %508 = vmatpush3.bf16.msra.mxu1 %v507_v24  ;;  %v528_v56 = vpack.c.bf16 %v222_v55, %v221_v53  ;;  %v531_v59 = vpack.c.bf16 %v224_v58, %v223_v57  ;;  %v225_v60 = vld [vmem:[%s786_s5 + $0x30] sm:$0xff]  ;;  %v226_v61 = vld [vmem:[%s786_s5 + $0x38] sm:$0xff]  ;;  %v227_v63 = vld [vmem:[%s786_s5 + $0x40] sm:$0xff] }
   0xf   :  { %509 = vmatprep.subr.bf16.mxu1 %v551_v0  ;;  %v534_v62 = vpack.c.bf16 %v226_v61, %v225_v60  ;;  %v228_v1 = vld [vmem:[%s786_s5 + $0x48] sm:$0xff]  ;;  %v317_v3 = vld [vmem:[%s787_s2] ss:$0 sm:$0xff]  ;;  %v229_v8 = vld [vmem:[%s786_s5 + $0x50] sm:$0xff] }
  0x10   :  { %487 = vmatpush3.bf16.msra.mxu0 %v486_v21  ;;  %v537_v2 = vpack.c.bf16 %v228_v1, %v227_v63  ;;  %v230_v9 = vld [vmem:[%s786_s5 + $0x58] sm:$0xff]  ;;  %v231_v11 = vld [vmem:[%s786_s5 + $0x60] sm:$0xff]  ;;  %v232_v12 = vld [vmem:[%s786_s5 + $0x68] sm:$0xff] }
  0x11   :  { %488 = vmatprep.subr.bf16.mxu0 %v551_v0  ;;  %v540_v10 = vpack.c.bf16 %v230_v9, %v229_v8  ;;  %v543_v13 = vpack.c.bf16 %v232_v12, %v231_v11  ;;  %v233_v14 = vld [vmem:[%s786_s5 + $0x70] sm:$0xff]  ;;  %v234_v15 = vld [vmem:[%s786_s5 + $0x78] sm:$0xff]  ;;  %v318_v17 = vld [vmem:[%s788_s4] ss:$0 sm:$0xff] }
  0x12   :  { %511 = vmatpush3.bf16.msra.mxu1 %v510_v30  ;;  %v546_v16 = vpack.c.bf16 %v234_v15, %v233_v14  ;;  %v319_v25 = vld [vmem:[%s789_s6] ss:$0 sm:$0xff] }
  0x13   :  { %512 = vmatprep.subr.bf16.mxu1 %v551_v0 }
  0x14   :  { %490 = vmatpush3.bf16.msra.mxu0 %v489_v27 }
  0x15   :  { %491 = vmatprep.subr.bf16.mxu0 %v551_v0 }
  0x16   :  { %514 = vmatpush3.bf16.msra.mxu1 %v513_v36 }
  0x17   :  { %515 = vmatprep.subr.bf16.mxu1 %v551_v0 }
  0x18   :  { %493 = vmatpush3.bf16.msra.mxu0 %v492_v33 }
  0x19   :  { %494 = vmatprep.subr.bf16.mxu0 %v551_v0 }
  0x1a   :  { %517 = vmatpush3.bf16.msra.mxu1 %v516_v42 }
  0x1b   :  { %518 = vmatprep.subr.bf16.mxu1 %v551_v0 }
  0x1c   :  { %496 = vmatpush3.bf16.msra.mxu0 %v495_v39 }
  0x1d   :  { %497 = vmatprep.subr.bf16.mxu0 %v551_v0 }
  0x1e   :  { %520 = vmatpush3.bf16.msra.mxu1 %v519_v46 }
  0x1f   :  { %521 = vmatprep.subr.bf16.mxu1 %v551_v0 }
  0x20   :  { %499 = vmatpush3.bf16.msra.mxu0 %v498_v45 }
  0x21   :  { %524 = vmatprep.subr.bf16.mxu0 %v551_v0 }
  0x22   :  { %523 = vmatpush3.bf16.msra.mxu1 %v522_v50 }
  0x23   :  { %404 = vmatmul.mubr.f32.vlgmr.msra.gmra.mrb[0].mxu0 %v26_v47 }
  0x24   :  { %473 = vmatprep.mubr.msk.f32.mxu0 %vm552_vm0, %v553_v4  ;;  %526 = vmatpush3.bf16.msra.mxu0 %v525_v54 }
  0x25   :  { %527 = vmatprep.subr.bf16.mxu0 %v551_v0 }
  0x28   :  { %529 = vmatpush3.bf16.msra.mxu0 %v528_v56 }
  0x29   :  { %530 = vmatprep.subr.bf16.mxu0 %v551_v0 }
  0x2c   :  { %532 = vmatpush3.bf16.msra.mxu0 %v531_v59 }
  0x2d   :  { %533 = vmatprep.subr.bf16.mxu0 %v551_v0 }
  0x30   :  { %535 = vmatpush3.bf16.msra.mxu0 %v534_v62 }
  0x31   :  { %536 = vmatprep.subr.bf16.mxu0 %v551_v0 }
  0x34   :  { %538 = vmatpush3.bf16.msra.mxu0 %v537_v2 }
  0x35   :  { %539 = vmatprep.subr.bf16.mxu0 %v551_v0 }
  0x38   :  { %541 = vmatpush3.bf16.msra.mxu0 %v540_v10 }
  0x39   :  { %542 = vmatprep.subr.bf16.mxu0 %v551_v0 }
  0x3c   :  { %544 = vmatpush3.bf16.msra.mxu0 %v543_v13 }
  0x3d   :  { %545 = vmatprep.subr.bf16.mxu0 %v551_v0 }
  0x40   :  { %547 = vmatpush3.bf16.msra.mxu0 %v546_v16 }
  0xf6   :  { %v116_v4 = vpop.f32.mrb[0].mxu0 }
  0xf7   :  { %v117_v5 = vadd.f32 %v317_v3, %v116_v4  ;;  %v405_v6 = vpop.f32.mrb[1].mxu0 }
  0xf9   :  { %v120_v7 = vmax.f32 %v117_v5, 0.0 }
  0xfb   :  { %439 = vmatmul.mubr.f32.vlgmr.msra.gmra.mrb[0].mxu1 %v120_v7 }
 0x1ce   :  { %v210_v18 = vpop.f32.mrb[0].mxu1 }
 0x1cf   :  { %v211_v19 = vadd.f32 %v318_v17, %v210_v18  ;;  %v440_v20 = vpop.f32.mrb[1].mxu1 }
 0x1d1   :  { %v214_v21 = vadd.f32 3.0, %v211_v19 }
 0x1d3   :  { %v215_v22 = vmax.f32 %v214_v21, 0.0 }
 0x1d5   :  { %v216_v0 = vmin.f32 %v215_v22, 6.0 }
 0x1d7   :  { %v217_v23 = vmul.f32 %v216_v0, %v211_v19 }
 0x1d9   :  { %v218_v24 = vmul.f32 0.16666667, %v217_v23 }
 0x1db   :  { %474 = vmatmul.mubr.f32.vlgmr.msra.gmra.mrb[2].mxu0 %v218_v24 }
 0x2ae   :  { %v308_v26 = vpop.f32.mrb[2].mxu0 }
 0x2af   :  { %v309_v27 = vadd.f32 %v319_v25, %v308_v26  ;;  %v475_v28 = vpop.f32.mrb[3].mxu0 }
 0x2b1   :  { %312 = vst [vmem:[%s790_s7] sm:$0xff] %v309_v27 }

</bundles_post_ra>
